<compile_context>
chip_gen: v6e
topology: v6e:2x2x1
jax: 0.10.0
libtpu: 0.0.40
codegen_flags: <defaults>
</compile_context>

<pallas_src>
import functools

import jax
import jax.numpy as jnp
from jax import lax
from jax.experimental import pallas as pl
from jax.experimental.pallas import tpu as pltpu


# ------------------------- generation-aware budgets -------------------------

def _tpu_vmem_capacity_bytes():
    try:
        return int(pltpu.get_tpu_info().vmem_capacity_bytes)
    except Exception:
        return 64 * 1024 * 1024  # conservative (v7x-sized) fallback


_VMEM_CAP = _tpu_vmem_capacity_bytes()
_VMEM_LIMIT_BYTES = int(min(_VMEM_CAP * 3 // 4, 96 * 1024 * 1024))
_BIG_VMEM = _VMEM_CAP >= 100 * 1024 * 1024          # v5e/v6e: 128 MiB; v7x: 64 MiB
_LIN_TM, _LIN_TN, _LIN_TK = (512, 512, 1024) if _BIG_VMEM else (256, 256, 512)


def _fit_tile(dim, target, align):
    """Largest tile <= target that is a multiple of `align` and divides `dim`.
    Falls back to the full dimension (always a legal block extent)."""
    if dim <= target:
        return dim
    t = (target // align) * align
    while t >= align:
        if dim % t == 0:
            return t
        t -= align
    return dim


# ------------------------------- linear -------------------------------

def _linear_kernel(x_ref, w_ref, b_ref, o_ref):
    # f32 output: accumulate directly into the resident output block (P3),
    # initializing it with the bias at the first k step.
    @pl.when(pl.program_id(2) == 0)
    def _():
        o_ref[...] = jnp.broadcast_to(b_ref[...], o_ref.shape).astype(o_ref.dtype)

    o_ref[...] += jnp.dot(x_ref[...], w_ref[...],
                          preferred_element_type=jnp.float32)


def linear(x2d, w, b, *, tm=None, tn=None, tk=None):
    """x2d: (M, K), w: (K, N) (= torch W^T), b: (1, N) -> (M, N), f32 only."""
    M, K = x2d.shape
    K2, N = w.shape
    assert K == K2
    assert x2d.dtype == jnp.float32, "in-place f32 accumulation path only"
    tm = _fit_tile(M, tm or _LIN_TM, 8)
    tn = _fit_tile(N, tn or _LIN_TN, 128)
    tk = _fit_tile(K, tk or _LIN_TK, 128)
    # Expose >=2 parallel M-blocks (v7x has 2 TensorCores) when M is large.
    if M // tm < 2 and M >= 256:
        tm = _fit_tile(M, max(8, M // 2), 8)
    return pl.pallas_call(
        _linear_kernel,
        out_shape=jax.ShapeDtypeStruct((M, N), x2d.dtype),
        grid=(M // tm, N // tn, K // tk),
        in_specs=[
            pl.BlockSpec((tm, tk), lambda i, j, k: (i, k)),
            pl.BlockSpec((tk, tn), lambda i, j, k: (k, j)),
            pl.BlockSpec((1, tn), lambda i, j, k: (0, j)),
        ],
        out_specs=pl.BlockSpec((tm, tn), lambda i, j, k: (i, j)),
        compiler_params=pltpu.CompilerParams(
            dimension_semantics=("parallel", "parallel", "arbitrary"),
            vmem_limit_bytes=_VMEM_LIMIT_BYTES),
    )(x2d, w, b)


# ----------------- spatial-reduction linear fused with LayerNorm -----------------

def _linear_ln_kernel(x_ref, w_ref, b_ref, g_ref, bb_ref, o_ref, *, eps):
    k = pl.program_id(1)

    @pl.when(k == 0)
    def _():
        o_ref[...] = jnp.broadcast_to(b_ref[...], o_ref.shape).astype(o_ref.dtype)

    o_ref[...] += jnp.dot(x_ref[...], w_ref[...],
                          preferred_element_type=jnp.float32)

    @pl.when(k == pl.num_programs(1) - 1)
    def _():
        y = o_ref[...]
        mu = jnp.mean(y, axis=-1, keepdims=True)
        yc = y - mu
        var = jnp.mean(yc * yc, axis=-1, keepdims=True)   # biased var (torch LN)
        o_ref[...] = (yc * lax.rsqrt(var + eps) * g_ref[...]
                      + bb_ref[...]).astype(o_ref.dtype)


def linear_layernorm(x2d, w, b, gamma, beta, *, eps=1e-5, tm=None, tk=None):
    """(x2d @ w + b) followed by LayerNorm over the output features, fused."""
    M, K = x2d.shape
    K2, N = w.shape
    assert K == K2
    assert x2d.dtype == jnp.float32
    tm = _fit_tile(M, tm or _LIN_TM, 8)
    tk = _fit_tile(K, tk or _LIN_TK, 128)
    if M // tm < 2 and M >= 256:
        tm = _fit_tile(M, max(8, M // 2), 8)
    # N is not tiled (LN needs the full feature row; N = dim is small).
    return pl.pallas_call(
        functools.partial(_linear_ln_kernel, eps=eps),
        out_shape=jax.ShapeDtypeStruct((M, N), x2d.dtype),
        grid=(M // tm, K // tk),
        in_specs=[
            pl.BlockSpec((tm, tk), lambda i, k: (i, k)),
            pl.BlockSpec((tk, N), lambda i, k: (k, 0)),
            pl.BlockSpec((1, N), lambda i, k: (0, 0)),
            pl.BlockSpec((1, N), lambda i, k: (0, 0)),
            pl.BlockSpec((1, N), lambda i, k: (0, 0)),
        ],
        out_specs=pl.BlockSpec((tm, N), lambda i, k: (i, 0)),
        compiler_params=pltpu.CompilerParams(
            dimension_semantics=("parallel", "arbitrary"),
            vmem_limit_bytes=_VMEM_LIMIT_BYTES),
    )(x2d, w, b, gamma, beta)


# -------------------------- attention kernels --------------------------

def _attn_single_kv_kernel(q_ref, kv_ref, o_ref, *, num_heads, head_dim, dim):
    """One kv tile: plain one-pass softmax, no online-softmax state."""
    q_all = q_ref[0]            # (tq, C)   lane-dense load
    kv_all = kv_ref[0]          # (Nk, 2C)  lane-dense load, k | v packed on lanes
    nk = kv_all.shape[0]
    ones_col = jnp.ones((nk, 1), jnp.bfloat16)   # hoisted out of the head loop

    for h in range(num_heads):
        lo = h * head_dim
        hi = lo + head_dim
        qh = q_all[:, lo:hi].astype(jnp.bfloat16)            # scale pre-folded
        kh = kv_all[:, lo:hi].astype(jnp.bfloat16)
        vh = kv_all[:, dim + lo:dim + hi].astype(jnp.bfloat16)

        # q @ k^T without materializing a transpose.
        s = lax.dot_general(qh, kh, (((1,), (1,)), ((), ())),
                            preferred_element_type=jnp.float32)   # (tq, nk) f32
        m = jnp.max(s, axis=-1, keepdims=True)
        p = jnp.exp(s - m)
        pb = p.astype(jnp.bfloat16)
        pv = jnp.dot(pb, vh, preferred_element_type=jnp.float32)        # (tq, d)
        # row-sum on the MXU (frees the XLU slot)
        l = jnp.dot(pb, ones_col, preferred_element_type=jnp.float32)   # (tq, 1)
        o_ref[0, :, lo:hi] = (pv * pl.reciprocal(l, approx=True)
                              ).astype(o_ref.dtype)


def _flash_attn_kernel(q_ref, kv_ref, o_ref, m_sc, l_sc, acc_sc,
                       *, num_heads, head_dim, dim):
    """General flash/online-softmax path. Scratch is lane-dense:
    acc_sc (tq, C) f32, m_sc/l_sc (tq, num_heads) f32."""
    kv_i = pl.program_id(2)

    @pl.when(kv_i == 0)
    def _():
        m_sc[...] = jnp.full(m_sc.shape, -jnp.inf, jnp.float32)
        l_sc[...] = jnp.zeros(l_sc.shape, jnp.float32)
        acc_sc[...] = jnp.zeros(acc_sc.shape, jnp.float32)

    q_all = q_ref[0]
    kv_all = kv_ref[0]
    nk = kv_all.shape[0]
    ones_col = jnp.ones((nk, 1), jnp.bfloat16)

    for h in range(num_heads):
        lo = h * head_dim
        hi = lo + head_dim
        qh = q_all[:, lo:hi].astype(jnp.bfloat16)
        kh = kv_all[:, lo:hi].astype(jnp.bfloat16)
        vh = kv_all[:, dim + lo:dim + hi].astype(jnp.bfloat16)

        s = lax.dot_general(qh, kh, (((1,), (1,)), ((), ())),
                            preferred_element_type=jnp.float32)   # (tq, tkv)
        m_prev = m_sc[:, h:h + 1]
        m_new = jnp.maximum(m_prev, jnp.max(s, axis=-1, keepdims=True))
        alpha = jnp.exp(m_prev - m_new)
        p = jnp.exp(s - m_new)
        pb = p.astype(jnp.bfloat16)
        pv = jnp.dot(pb, vh, preferred_element_type=jnp.float32)
        ps = jnp.dot(pb, ones_col, preferred_element_type=jnp.float32)  # row sum
        l_sc[:, h:h + 1] = alpha * l_sc[:, h:h + 1] + ps
        acc_sc[:, lo:hi] = alpha * acc_sc[:, lo:hi] + pv
        m_sc[:, h:h + 1] = m_new

    @pl.when(kv_i == pl.num_programs(2) - 1)
    def _():
        for h in range(num_heads):
            lo = h * head_dim
            hi = lo + head_dim
            inv_l = pl.reciprocal(l_sc[:, h:h + 1], approx=True)
            o_ref[0, :, lo:hi] = (acc_sc[:, lo:hi] * inv_l).astype(o_ref.dtype)


def flash_attention(q, kv, *, num_heads, tq=128, tkv=256):
    """q: (B, Nq, C) (scale pre-folded); kv: (B, Nk, 2C) with k|v packed on the
    last axis, heads packed along C. Returns (B, Nq, C)."""
    B, Nq, C = q.shape
    _, Nk, C2 = kv.shape
    assert C2 == 2 * C and C % num_heads == 0
    head_dim = C // num_heads
    tq = _fit_tile(Nq, tq, 8)
    # Make sure >=2 parallel blocks exist (v7x has 2 TensorCores).
    if B * (Nq // tq) < 2 and Nq >= 16:
        tq = _fit_tile(Nq, max(8, Nq // 2), 8)

    if Nk <= tkv:
        # Common case after spatial reduction: single kv tile, one-pass softmax.
        return pl.pallas_call(
            functools.partial(_attn_single_kv_kernel, num_heads=num_heads,
                              head_dim=head_dim, dim=C),
            out_shape=jax.ShapeDtypeStruct((B, Nq, C), q.dtype),
            grid=(B, Nq // tq),
            in_specs=[
                pl.BlockSpec((1, tq, C), lambda b, qi: (b, qi, 0)),
                pl.BlockSpec((1, Nk, 2 * C), lambda b, qi: (b, 0, 0)),
            ],
            out_specs=pl.BlockSpec((1, tq, C), lambda b, qi: (b, qi, 0)),
            compiler_params=pltpu.CompilerParams(
                dimension_semantics=("parallel", "parallel"),
                vmem_limit_bytes=_VMEM_LIMIT_BYTES),
        )(q, kv)

    tkv = _fit_tile(Nk, tkv, 8)
    return pl.pallas_call(
        functools.partial(_flash_attn_kernel, num_heads=num_heads,
                          head_dim=head_dim, dim=C),
        out_shape=jax.ShapeDtypeStruct((B, Nq, C), q.dtype),
        grid=(B, Nq // tq, Nk // tkv),
        in_specs=[
            pl.BlockSpec((1, tq, C), lambda b, qi, ki: (b, qi, 0)),
            pl.BlockSpec((1, tkv, 2 * C), lambda b, qi, ki: (b, ki, 0)),
        ],
        out_specs=pl.BlockSpec((1, tq, C), lambda b, qi, ki: (b, qi, 0)),
        scratch_shapes=[
            pltpu.VMEM((tq, num_heads), jnp.float32),   # running max (lane-dense)
            pltpu.VMEM((tq, num_heads), jnp.float32),   # running sum (lane-dense)
            pltpu.VMEM((tq, C), jnp.float32),           # output accumulator
        ],
        compiler_params=pltpu.CompilerParams(
            dimension_semantics=("parallel", "parallel", "arbitrary"),
            vmem_limit_bytes=_VMEM_LIMIT_BYTES),
    )(q, kv)


# --------------------------- parameters & forward ---------------------------

def init_attention_params(key, dim, num_heads, sr_ratio, qkv_bias=False):
    """Deterministic, shape-correct init mirroring Attention.__init__/_init_weights."""
    del qkv_bias  # bias tensors kept (zero) so the math matches qkv_bias=False
    ks = jax.random.split(key, 5)
    dt = jnp.float32

    def trunc_normal(k, shape, std=0.02):
        return jax.random.truncated_normal(k, -2.0, 2.0, shape, dt) * std

    params = {
        # weights stored as (in, out) = torch W^T
        "q_w": trunc_normal(ks[0], (dim, dim)),
        "q_b": jnp.zeros((1, dim), dt),
        "kv_w": trunc_normal(ks[1], (dim, 2 * dim)),
        "kv_b": jnp.zeros((1, 2 * dim), dt),
        "proj_w": trunc_normal(ks[2], (dim, dim)),
        "proj_b": jnp.zeros((1, dim), dt),
    }
    if sr_ratio > 1:
        s = sr_ratio
        fan_out = s * s * dim
        w_conv = jax.random.normal(ks[3], (dim, dim, s, s), dt) * jnp.sqrt(2.0 / fan_out)
        # flatten (kh, kw, Cin) x Cout to match the patch-matmul layout below
        params["sr_w"] = jnp.transpose(w_conv, (2, 3, 1, 0)).reshape(s * s * dim, dim)
        params["sr_b"] = jnp.zeros((1, dim), dt)
        params["ln_g"] = jnp.ones((1, dim), dt)
        params["ln_b"] = jnp.zeros((1, dim), dt)
    return params


def attention_forward(params, x, H, W, num_heads, sr_ratio):
    B, N, C = x.shape
    head_dim = C // num_heads
    scale = head_dim ** -0.5

    x2d = x.reshape(B * N, C)

    # q projection; qk scale folded into the (tiny) weight/bias: free.
    q = linear(x2d, params["q_w"] * scale, params["q_b"] * scale).reshape(B, N, C)

    # spatial reduction for k/v (non-overlapping conv as patch matmul) + fused LN
    if sr_ratio > 1:
        s = sr_ratio
        # TODO(synk): express this patch extraction as strided block DMA inside
        # the sr kernel's index_map to remove the XLA-side HBM materialization.
        xs = x.reshape(B, H // s, s, W // s, s, C).transpose(0, 1, 3, 2, 4, 5)
        xs = xs.reshape(B * (H // s) * (W // s), s * s * C)
        x_ = linear_layernorm(xs, params["sr_w"], params["sr_b"],
                              params["ln_g"], params["ln_b"])
        Nk = (H // s) * (W // s)
    else:
        x_ = x2d
        Nk = N

    # single fused kv projection; (B, Nk, 2C) is consumed directly by attention
    kv = linear(x_, params["kv_w"], params["kv_b"]).reshape(B, Nk, 2 * C)

    # fused attention directly in (B, N, C) layout (attn_drop identity at p=0.0)
    o = flash_attention(q, kv, num_heads=num_heads)

    # output projection (proj_drop identity at p=0.0)
    out = linear(o.reshape(B * N, C), params["proj_w"], params["proj_b"])
    return out.reshape(B, N, C)


# ------------------------------ pure-JAX reference ------------------------------

def attention_reference(params, x, H, W, num_heads, sr_ratio):
    B, N, C = x.shape
    d = C // num_heads
    scale = d ** -0.5
    q = (x @ params["q_w"] + params["q_b"]).reshape(B, N, num_heads, d).transpose(0, 2, 1, 3)
    if sr_ratio > 1:
        s = sr_ratio
        xs = x.reshape(B, H // s, s, W // s, s, C).transpose(0, 1, 3, 2, 4, 5)
        xs = xs.reshape(B, (H // s) * (W // s), s * s * C)
        x_ = xs @ params["sr_w"] + params["sr_b"]
        mu = x_.mean(-1, keepdims=True)
        var = ((x_ - mu) ** 2).mean(-1, keepdims=True)
        x_ = (x_ - mu) / jnp.sqrt(var + 1e-5) * params["ln_g"] + params["ln_b"]
    else:
        x_ = x
    Nk = x_.shape[1]
    kv = (x_ @ params["kv_w"] + params["kv_b"]).reshape(B, Nk, 2, num_heads, d)
    kv = kv.transpose(2, 0, 3, 1, 4)
    k, v = kv[0], kv[1]
    attn = jnp.einsum("bhqd,bhkd->bhqk", q, k) * scale
    attn = jax.nn.softmax(attn, axis=-1)
    o = jnp.einsum("bhqk,bhkd->bhqd", attn, v).transpose(0, 2, 1, 3).reshape(B, N, C)
    return o @ params["proj_w"] + params["proj_b"]


# ---------------------------------- main ----------------------------------

if __name__ == "__main__":
    B, C = 2, 32
    H = W = 16
    N = H * W
    num_heads = 4
    sr_ratio = 2

    key = jax.random.PRNGKey(0)
    kx, kp, kq, kk = jax.random.split(key, 4)
    x = jax.random.normal(kx, (B, N, C), jnp.float32)

    params = init_attention_params(kp, C, num_heads, sr_ratio, qkv_bias=False)

    out = jax.block_until_ready(attention_forward(params, x, H, W, num_heads, sr_ratio))
    assert out.shape == (B, N, C) and out.dtype == jnp.float32

    ref = attention_reference(params, x, H, W, num_heads, sr_ratio)
    err = float(jnp.max(jnp.abs(out - ref)))
    assert jnp.allclose(out, ref, atol=2e-3, rtol=2e-2), f"max abs err {err}"

    # Also exercise both attention kernel paths (single-kv one-pass softmax and
    # multi-kv online softmax) on standalone O(1)-magnitude inputs.
    d = C // num_heads
    q_t = jax.random.normal(kq, (B, 128, C), jnp.float32) * (d ** -0.5)
    kv_t = jax.random.normal(kk, (B, 64, 2 * C), jnp.float32)
    o_single = jax.block_until_ready(
        flash_attention(q_t, kv_t, num_heads=num_heads, tq=64, tkv=256))
    o_multi = jax.block_until_ready(
        flash_attention(q_t, kv_t, num_heads=num_heads, tq=64, tkv=32))
    qh = q_t.reshape(B, 128, num_heads, d).transpose(0, 2, 1, 3)
    kh = kv_t[..., :C].reshape(B, 64, num_heads, d).transpose(0, 2, 1, 3)
    vh = kv_t[..., C:].reshape(B, 64, num_heads, d).transpose(0, 2, 1, 3)
    a = jax.nn.softmax(jnp.einsum("bhqd,bhkd->bhqk", qh, kh), axis=-1)
    o_ref2 = jnp.einsum("bhqk,bhkd->bhqd", a, vh).transpose(0, 2, 1, 3).reshape(B, 128, C)
    assert jnp.allclose(o_single, o_ref2, atol=2e-2, rtol=2e-2), \
        float(jnp.max(jnp.abs(o_single - o_ref2)))
    assert jnp.allclose(o_multi, o_ref2, atol=2e-2, rtol=2e-2), \
        float(jnp.max(jnp.abs(o_multi - o_ref2)))

    print("KERNEL_OK")
</pallas_src>

<mosaic_0001>
module attributes {stable_mosaic.version = 11 : i64} {
  func.func @_linear_kernel(%arg0: i32, %arg1: i32, %arg2: i32, %arg3: memref<256x32xf32, #tpu.memory_space<vmem>>, %arg4: memref<32x32xf32, #tpu.memory_space<vmem>>, %arg5: memref<1x32xf32, #tpu.memory_space<vmem>>, %arg6: memref<256x32xf32, #tpu.memory_space<vmem>>) attributes {dimension_semantics = [#tpu.dimension_semantics<parallel>, #tpu.dimension_semantics<parallel>, #tpu.dimension_semantics<arbitrary>], iteration_bounds = array<i64: 2, 1, 1>, scalar_prefetch = 0 : i64, scratch_operands = 0 : i64, tpu.core_type = #tpu.core_type<tc>, window_params = [{transform_indices = @transform_0, window_bounds = array<i64: 256, 32>}, {transform_indices = @transform_1, window_bounds = array<i64: 32, 32>}, {transform_indices = @transform_2, window_bounds = array<i64: 1, 32>}, {transform_indices = @transform_3, window_bounds = array<i64: 256, 32>}]} {
    %c0_i32 = arith.constant 0 : i32
    %0 = arith.cmpi eq, %arg2, %c0_i32 : i32
    %1 = arith.extui %0 : i1 to i32
    %c0_i32_0 = arith.constant 0 : i32
    %2 = arith.cmpi ne, %1, %c0_i32_0 : i32
    scf.if %2 {
      %c0_8 = arith.constant 0 : index
      %c0_9 = arith.constant 0 : index
      %9 = vector.load %arg5[%c0_8, %c0_9] : memref<1x32xf32, #tpu.memory_space<vmem>>, vector<1x32xf32>
      %10 = vector.shape_cast %9 : vector<1x32xf32> to vector<1x32xf32>
      %11 = vector.broadcast %10 : vector<1x32xf32> to vector<256x32xf32>
      %c0_10 = arith.constant 0 : index
      %c0_11 = arith.constant 0 : index
      %12 = vector.load %arg6[%c0_10, %c0_11] : memref<256x32xf32, #tpu.memory_space<vmem>>, vector<256x32xf32>
      tpu.vector_store %arg6[%c0_10, %c0_11], %11 {strides = array<i32>} : memref<256x32xf32, #tpu.memory_space<vmem>>, vector<256x32xf32>,
    } else {
    }
    %c0 = arith.constant 0 : index
    %c0_1 = arith.constant 0 : index
    %3 = vector.load %arg6[%c0, %c0_1] : memref<256x32xf32, #tpu.memory_space<vmem>>, vector<256x32xf32>
    %c0_2 = arith.constant 0 : index
    %c0_3 = arith.constant 0 : index
    %4 = vector.load %arg3[%c0_2, %c0_3] : memref<256x32xf32, #tpu.memory_space<vmem>>, vector<256x32xf32>
    %c0_4 = arith.constant 0 : index
    %c0_5 = arith.constant 0 : index
    %5 = vector.load %arg4[%c0_4, %c0_5] : memref<32x32xf32, #tpu.memory_space<vmem>>, vector<32x32xf32>
    %cst = arith.constant dense<0.000000e+00> : vector<256x32xf32>
    %6 = tpu.matmul %4, %5, %cst {dimension_numbers = #tpu.dot_dimension_numbers<[1], [0], [0], [1], [0, 0, 1, 1], [], []>} : vector<256x32xf32>, vector<32x32xf32>, vector<256x32xf32> -> vector<256x32xf32>
    %7 = arith.addf %3, %6 : vector<256x32xf32>
    %c0_6 = arith.constant 0 : index
    %c0_7 = arith.constant 0 : index
    %8 = vector.load %arg6[%c0_6, %c0_7] : memref<256x32xf32, #tpu.memory_space<vmem>>, vector<256x32xf32>
    tpu.vector_store %arg6[%c0_6, %c0_7], %7 {strides = array<i32>} : memref<256x32xf32, #tpu.memory_space<vmem>>, vector<256x32xf32>,
    return
  }
  func.func @transform_0(%arg0: i32, %arg1: i32, %arg2: i32) -> (i32, i32) {
    %c0_i32 = arith.constant 0 : i32
    return %arg0, %arg2 : i32, i32
  }
  func.func @transform_1(%arg0: i32, %arg1: i32, %arg2: i32) -> (i32, i32) {
    %c0_i32 = arith.constant 0 : i32
    return %arg2, %arg1 : i32, i32
  }
  func.func @transform_2(%arg0: i32, %arg1: i32, %arg2: i32) -> (i32, i32) {
    %c0_i32 = arith.constant 0 : i32
    %c0_i32_0 = arith.constant 0 : i32
    return %c0_i32, %arg1 : i32, i32
  }
  func.func @transform_3(%arg0: i32, %arg1: i32, %arg2: i32) -> (i32, i32) {
    %c0_i32 = arith.constant 0 : i32
    return %arg0, %arg1 : i32, i32
  }
}

</mosaic_0001>

<bundles_post_ra>
// kernel: tpu_custom_call.1
= control target key start
LH: loop header
LB: loop body
LE: loop exit
PB: predicated region body
PF: predicated region fallthrough
CT: control target
= control target key end

     0   :  { %s1082_s12 = smov 0   ;;  %s1084_s13 = smov 0   ;;  %s1358_s0 = inlined_call_operand.vmem [shape: f32[512,32], index: 0, kind: input, shape index: {}]   ;;  %s1359_s1 = inlined_call_operand.vmem [shape: f32[32,32], index: 1, kind: input, shape index: {}]   ;;  %s1360_s2 = inlined_call_operand.vmem [shape: f32[1,32], index: 2, kind: input, shape index: {}]   ;;  %s1361_s3 = inlined_call_operand.vmem [shape: f32[512,32], index: 3, kind: output, shape index: {}]  }
   0x1   :  { %s1086_s14 = smov 0  }
   0x2 LB: > { %s32_s15 = sadd.s32 1, %s1056_s13  ;;  %p874_p0 = scmp.ge.s32.totalorder %s1060_s14, 1  ;;  %s1060_s14 = sphi %s1086_s14, %s13_s14   ;;  %s1056_s13 = sphi %s1084_s13, %s1363_s13   ;;  %s1052_s12 = sphi %s1082_s12, %s1362_s12  }
   0x3   : > { %p34_p1 = scmp.ge.s32.totalorder %s32_s15, 2  ;;  %p188_p2 = scmp.lt.s32.totalorder %s1060_s14, 3 }
   0x5   : > { %s1365_s15 = smov (%p34_p1, %s32_s15), 0  ;;  %p189_p3 = pnand %p874_p0, %p188_p2 }
   0x6   : > { %s875_s20 = sshll.u32 (!%p189_p3), %s1052_s12, 5 }
   0x7   : > { %192 = sbr.rel (%p189_p3) target bundleno = 248 (0xf8), region = 32  ;;  %p230_p4 = scmp.lt.s32.totalorder (!%p189_p3), %s875_s20, 63 }
   0xc   : > { %v370_v0 = vld [vmem:[%s1359_s1 + $0x18] sm:$0xff]  ;;  %v369_v1 = vld [vmem:[%s1359_s1 + $0x10] sm:$0xff]  ;;  %v368_v2 = vld [vmem:[%s1359_s1 + $0x8] sm:$0xff]  ;;  %s1367_s20 = smov (!%p230_p4, %s875_s20), 63  ;;  %vm270_vm0 = vcmask 261120  }
   0xd   : > { %950 = vmatprep.subr.mxu0 %v370_v0  ;;  %1006 = vmatprep.subr.mxu1 %v370_v0  ;;  %v367_v3 = vld [vmem:[%s1359_s1] sm:$0xff]  ;;  %s876_s27 = sshll.u32 %s1367_s20, 3 }
   0xe   : > { %951 = vmatpush3.msra.mxu0 %v370_v0  ;;  %1010 = vmatpush3.msra.mxu1 %v370_v0  ;;  %v879_v4 = vld [vmem:[%s1360_s2] ss:$0 sm:$0xff]  ;;  %s1118_s30 = scalar_lea.vmem %s1358_s0, %s876_s27  ;;  %s1123_s6 = scalar_lea.vmem %s1361_s3, %s876_s27 }
   0xf   : > { %952 = vmatprep.subr.mxu0 %v369_v1  ;;  %1007 = vmatprep.subr.mxu1 %v369_v1  ;;  %v335_v5 = vld [vmem:[%s1118_s30] sm:$0xff]  ;;  %v336_v7 = vld [vmem:[%s1118_s30 + $0x8] sm:$0xff]  ;;  %272 = vst.msk [vmem:[%s1123_s6 + $0x8] sm:$0xff] %vm270_vm0, %v879_v4  ;;  %271 = vst.msk [vmem:[%s1123_s6] sm:$0xff] %vm270_vm0, %v879_v4 }
  0x10   : > { %953 = vmatpush3.msra.mxu0 %v369_v1  ;;  %1011 = vmatpush3.msra.mxu1 %v369_v1  ;;  %v351_v6 = vld [vmem:[%s1118_s30 + $0x80] sm:$0xff]  ;;  %273 = vst.msk [vmem:[%s1123_s6 + $0x10] sm:$0xff] %vm270_vm0, %v879_v4  ;;  %274 = vst.msk [vmem:[%s1123_s6 + $0x18] sm:$0xff] %vm270_vm0, %v879_v4  ;;  %v352_v8 = vld [vmem:[%s1118_s30 + $0x88] sm:$0xff] }
  0x11   : > { %954 = vmatprep.subr.mxu0 %v368_v2  ;;  %1008 = vmatprep.subr.mxu1 %v368_v2  ;;  %275 = vst.msk [vmem:[%s1123_s6 + $0x20] sm:$0xff] %vm270_vm0, %v879_v4  ;;  %276 = vst.msk [vmem:[%s1123_s6 + $0x28] sm:$0xff] %vm270_vm0, %v879_v4  ;;  %v337_v9 = vld [vmem:[%s1118_s30 + $0x10] sm:$0xff]  ;;  %v338_v11 = vld [vmem:[%s1118_s30 + $0x18] sm:$0xff] }
  0x12   : > { %955 = vmatpush3.msra.mxu0 %v368_v2  ;;  %1012 = vmatpush3.msra.mxu1 %v368_v2  ;;  %277 = vst.msk [vmem:[%s1123_s6 + $0x30] sm:$0xff] %vm270_vm0, %v879_v4  ;;  %278 = vst.msk [vmem:[%s1123_s6 + $0x38] sm:$0xff] %vm270_vm0, %v879_v4  ;;  %v353_v10 = vld [vmem:[%s1118_s30 + $0x90] sm:$0xff]  ;;  %v354_v12 = vld [vmem:[%s1118_s30 + $0x98] sm:$0xff] }
  0x13   : > { %956 = vmatprep.subr.mxu0 %v367_v3  ;;  %1009 = vmatprep.subr.mxu1 %v367_v3  ;;  %279 = vst.msk [vmem:[%s1123_s6 + $0x40] sm:$0xff] %vm270_vm0, %v879_v4  ;;  %280 = vst.msk [vmem:[%s1123_s6 + $0x48] sm:$0xff] %vm270_vm0, %v879_v4  ;;  %v339_v13 = vld [vmem:[%s1118_s30 + $0x20] sm:$0xff]  ;;  %v340_v15 = vld [vmem:[%s1118_s30 + $0x28] sm:$0xff] }
  0x14   : > { %281 = vst.msk [vmem:[%s1123_s6 + $0x50] sm:$0xff] %vm270_vm0, %v879_v4  ;;  %282 = vst.msk [vmem:[%s1123_s6 + $0x58] sm:$0xff] %vm270_vm0, %v879_v4  ;;  %957 = vmatpush3.msra.mxu0 %v367_v3  ;;  %1013 = vmatpush3.msra.mxu1 %v367_v3  ;;  %v355_v14 = vld [vmem:[%s1118_s30 + $0xa0] sm:$0xff]  ;;  %v356_v16 = vld [vmem:[%s1118_s30 + $0xa8] sm:$0xff] }
  0x15   : > { %283 = vst.msk [vmem:[%s1123_s6 + $0x60] sm:$0xff] %vm270_vm0, %v879_v4  ;;  %284 = vst.msk [vmem:[%s1123_s6 + $0x68] sm:$0xff] %vm270_vm0, %v879_v4  ;;  %958 = vmatprep.mubr.msk.f32.mxu0 %vm270_vm0, %v335_v5  ;;  %982 = vmatprep.mubr.msk.f32.mxu1 %vm270_vm0, %v351_v6  ;;  %v341_v17 = vld [vmem:[%s1118_s30 + $0x30] sm:$0xff]  ;;  %v342_v19 = vld [vmem:[%s1118_s30 + $0x38] sm:$0xff] }
  0x16   : > { %285 = vst.msk [vmem:[%s1123_s6 + $0x70] sm:$0xff] %vm270_vm0, %v879_v4  ;;  %286 = vst.msk [vmem:[%s1123_s6 + $0x78] sm:$0xff] %vm270_vm0, %v879_v4  ;;  %959 = vmatmul.mubr.msk.f32.vlgmr.msra.gmra.mxu0 %vm270_vm0, %v336_v7  ;;  %983 = vmatmul.mubr.msk.f32.vlgmr.msra.gmra.mxu1 %vm270_vm0, %v352_v8  ;;  %v357_v18 = vld [vmem:[%s1118_s30 + $0xb0] sm:$0xff]  ;;  %v358_v20 = vld [vmem:[%s1118_s30 + $0xb8] sm:$0xff] }
  0x17   : > { %287 = vst.msk [vmem:[%s1123_s6 + $0x80] sm:$0xff] %vm270_vm0, %v879_v4  ;;  %288 = vst.msk [vmem:[%s1123_s6 + $0x88] sm:$0xff] %vm270_vm0, %v879_v4  ;;  %961 = vmatprep.mubr.msk.f32.mxu0 %vm270_vm0, %v337_v9  ;;  %985 = vmatprep.mubr.msk.f32.mxu1 %vm270_vm0, %v353_v10  ;;  %v343_v21 = vld [vmem:[%s1118_s30 + $0x40] sm:$0xff]  ;;  %v344_v23 = vld [vmem:[%s1118_s30 + $0x48] sm:$0xff] }
  0x18   : > { %289 = vst.msk [vmem:[%s1123_s6 + $0x90] sm:$0xff] %vm270_vm0, %v879_v4  ;;  %290 = vst.msk [vmem:[%s1123_s6 + $0x98] sm:$0xff] %vm270_vm0, %v879_v4  ;;  %v359_v22 = vld [vmem:[%s1118_s30 + $0xc0] sm:$0xff]  ;;  %v360_v24 = vld [vmem:[%s1118_s30 + $0xc8] sm:$0xff] }
  0x19   : > { %291 = vst.msk [vmem:[%s1123_s6 + $0xa0] sm:$0xff] %vm270_vm0, %v879_v4  ;;  %292 = vst.msk [vmem:[%s1123_s6 + $0xa8] sm:$0xff] %vm270_vm0, %v879_v4  ;;  %v345_v25 = vld [vmem:[%s1118_s30 + $0x50] sm:$0xff]  ;;  %v346_v27 = vld [vmem:[%s1118_s30 + $0x58] sm:$0xff] }
  0x1a   : > { %293 = vst.msk [vmem:[%s1123_s6 + $0xb0] sm:$0xff] %vm270_vm0, %v879_v4  ;;  %294 = vst.msk [vmem:[%s1123_s6 + $0xb8] sm:$0xff] %vm270_vm0, %v879_v4  ;;  %962 = vmatmul.mubr.msk.f32.gmra.mxu0 %vm270_vm0, %v338_v11  ;;  %986 = vmatmul.mubr.msk.f32.gmra.mxu1 %vm270_vm0, %v354_v12  ;;  %v361_v26 = vld [vmem:[%s1118_s30 + $0xd0] sm:$0xff]  ;;  %v362_v28 = vld [vmem:[%s1118_s30 + $0xd8] sm:$0xff] }
  0x1b   : > { %295 = vst.msk [vmem:[%s1123_s6 + $0xc0] sm:$0xff] %vm270_vm0, %v879_v4  ;;  %296 = vst.msk [vmem:[%s1123_s6 + $0xc8] sm:$0xff] %vm270_vm0, %v879_v4  ;;  %964 = vmatprep.mubr.msk.f32.mxu0 %vm270_vm0, %v339_v13  ;;  %988 = vmatprep.mubr.msk.f32.mxu1 %vm270_vm0, %v355_v14  ;;  %v347_v29 = vld [vmem:[%s1118_s30 + $0x60] sm:$0xff]  ;;  %v348_v31 = vld [vmem:[%s1118_s30 + $0x68] sm:$0xff] }
  0x1c   : > { %297 = vst.msk [vmem:[%s1123_s6 + $0xd0] sm:$0xff] %vm270_vm0, %v879_v4  ;;  %298 = vst.msk [vmem:[%s1123_s6 + $0xd8] sm:$0xff] %vm270_vm0, %v879_v4  ;;  %v363_v30 = vld [vmem:[%s1118_s30 + $0xe0] sm:$0xff]  ;;  %v364_v32 = vld [vmem:[%s1118_s30 + $0xe8] sm:$0xff] }
  0x1d   : > { %299 = vst.msk [vmem:[%s1123_s6 + $0xe0] sm:$0xff] %vm270_vm0, %v879_v4  ;;  %300 = vst.msk [vmem:[%s1123_s6 + $0xe8] sm:$0xff] %vm270_vm0, %v879_v4  ;;  %v349_v33 = vld [vmem:[%s1118_s30 + $0x70] sm:$0xff]  ;;  %v350_v35 = vld [vmem:[%s1118_s30 + $0x78] sm:$0xff] }
  0x1e   : > { %301 = vst.msk [vmem:[%s1123_s6 + $0xf0] sm:$0xff] %vm270_vm0, %v879_v4  ;;  %302 = vst.msk [vmem:[%s1123_s6 + $0xf8] sm:$0xff] %vm270_vm0, %v879_v4  ;;  %965 = vmatmul.mubr.msk.f32.gmra.mxu0 %vm270_vm0, %v340_v15  ;;  %989 = vmatmul.mubr.msk.f32.gmra.mxu1 %vm270_vm0, %v356_v16  ;;  %v365_v34 = vld [vmem:[%s1118_s30 + $0xf0] sm:$0xff]  ;;  %v366_v36 = vld [vmem:[%s1118_s30 + $0xf8] sm:$0xff] }
  0x1f   : > { %967 = vmatprep.mubr.msk.f32.mxu0 %vm270_vm0, %v341_v17  ;;  %991 = vmatprep.mubr.msk.f32.mxu1 %vm270_vm0, %v357_v18  ;;  %v304_v37 = vld [vmem:[%s1123_s6 + $0x8] sm:$0xff]  ;;  %v303_v41 = vld [vmem:[%s1123_s6] sm:$0xff]  ;;  %v306_v47 = vld [vmem:[%s1123_s6 + $0x18] sm:$0xff] }
  0x20   : > { %v320_v38 = vld [vmem:[%s1123_s6 + $0x88] sm:$0xff]  ;;  %v319_v42 = vld [vmem:[%s1123_s6 + $0x80] sm:$0xff]  ;;  %v322_v48 = vld [vmem:[%s1123_s6 + $0x98] sm:$0xff] }
  0x21   : > { %v305_v53 = vld [vmem:[%s1123_s6 + $0x10] sm:$0xff]  ;;  %v308_v59 = vld [vmem:[%s1123_s6 + $0x28] sm:$0xff]  ;;  %v307_v1 = vld [vmem:[%s1123_s6 + $0x20] sm:$0xff] }
  0x22   : > { %968 = vmatmul.mubr.msk.f32.gmra.mxu0 %vm270_vm0, %v342_v19  ;;  %992 = vmatmul.mubr.msk.f32.gmra.mxu1 %vm270_vm0, %v358_v20  ;;  %v321_v54 = vld [vmem:[%s1123_s6 + $0x90] sm:$0xff]  ;;  %v324_v60 = vld [vmem:[%s1123_s6 + $0xa8] sm:$0xff]  ;;  %v323_v2 = vld [vmem:[%s1123_s6 + $0xa0] sm:$0xff] }
  0x23   : > { %970 = vmatprep.mubr.msk.f32.mxu0 %vm270_vm0, %v343_v21  ;;  %994 = vmatprep.mubr.msk.f32.mxu1 %vm270_vm0, %v359_v22  ;;  %v310_v7 = vld [vmem:[%s1123_s6 + $0x38] sm:$0xff]  ;;  %v309_v13 = vld [vmem:[%s1123_s6 + $0x30] sm:$0xff]  ;;  %v312_v19 = vld [vmem:[%s1123_s6 + $0x48] sm:$0xff] }
  0x24   : > { %v326_v8 = vld [vmem:[%s1123_s6 + $0xb8] sm:$0xff]  ;;  %v325_v14 = vld [vmem:[%s1123_s6 + $0xb0] sm:$0xff]  ;;  %v328_v20 = vld [vmem:[%s1123_s6 + $0xc8] sm:$0xff] }
  0x26   : > { %971 = vmatmul.mubr.msk.f32.gmra.mxu0 %vm270_vm0, %v344_v23  ;;  %995 = vmatmul.mubr.msk.f32.gmra.mxu1 %vm270_vm0, %v360_v24 }
  0x27   : > { %973 = vmatprep.mubr.msk.f32.mxu0 %vm270_vm0, %v345_v25  ;;  %997 = vmatprep.mubr.msk.f32.mxu1 %vm270_vm0, %v361_v26  ;;  %v311_v25 = vld [vmem:[%s1123_s6 + $0x40] sm:$0xff] }
  0x28   : > { %v327_v26 = vld [vmem:[%s1123_s6 + $0xc0] sm:$0xff] }
  0x2a   : > { %974 = vmatmul.mubr.msk.f32.gmra.mxu0 %vm270_vm0, %v346_v27  ;;  %998 = vmatmul.mubr.msk.f32.gmra.mxu1 %vm270_vm0, %v362_v28 }
  0x2b   : > { %976 = vmatprep.mubr.msk.f32.mxu0 %vm270_vm0, %v347_v29  ;;  %1000 = vmatprep.mubr.msk.f32.mxu1 %vm270_vm0, %v363_v30 }
  0x2e   : > { %977 = vmatmul.mubr.msk.f32.gmra.mxu0 %vm270_vm0, %v348_v31  ;;  %1001 = vmatmul.mubr.msk.f32.gmra.mxu1 %vm270_vm0, %v364_v32  ;;  %v314_v31 = vld [vmem:[%s1123_s6 + $0x58] sm:$0xff] }
  0x2f   : > { %979 = vmatprep.mubr.msk.f32.mxu0 %vm270_vm0, %v349_v33  ;;  %1003 = vmatprep.mubr.msk.f32.mxu1 %vm270_vm0, %v365_v34  ;;  %v330_v32 = vld [vmem:[%s1123_s6 + $0xd8] sm:$0xff] }
  0x32   : > { %980 = vmatmul.mubr.msk.f32.gmra.mxu0 %vm270_vm0, %v350_v35  ;;  %1004 = vmatmul.mubr.msk.f32.gmra.mxu1 %vm270_vm0, %v366_v36 }
  0xd6   : > { %v960_v39 = vpop.f32.mrf.mxu0  ;;  %v984_v40 = vpop.f32.mrf.mxu1 }
  0xd7   : > { %v694_v43 = vadd.f32 %v960_v39, %v304_v37  ;;  %v710_v44 = vadd.f32 %v984_v40, %v320_v38  ;;  %v313_v37 = vld [vmem:[%s1123_s6 + $0x50] sm:$0xff] }
  0xd8   : > { %v534_v45 = vpop.f32.mrf.mxu0  ;;  %v614_v46 = vpop.f32.mrf.mxu1  ;;  %v329_v38 = vld [vmem:[%s1123_s6 + $0xd0] sm:$0xff] }
  0xd9   : > { %726 = vst.msk [vmem:[%s1123_s6 + $0x8] sm:$0xff] %vm270_vm0, %v694_v43  ;;  %742 = vst.msk [vmem:[%s1123_s6 + $0x88] sm:$0xff] %vm270_vm0, %v710_v44  ;;  %v693_v49 = vadd.f32 %v534_v45, %v303_v41  ;;  %v709_v50 = vadd.f32 %v614_v46, %v319_v42  ;;  %v316_v43 = vld [vmem:[%s1123_s6 + $0x68] sm:$0xff] }
  0xda   : > { %v963_v51 = vpop.f32.mrf.mxu0  ;;  %v987_v52 = vpop.f32.mrf.mxu1  ;;  %v332_v44 = vld [vmem:[%s1123_s6 + $0xe8] sm:$0xff] }
  0xdb   : > { %725 = vst.msk [vmem:[%s1123_s6] sm:$0xff] %vm270_vm0, %v693_v49  ;;  %741 = vst.msk [vmem:[%s1123_s6 + $0x80] sm:$0xff] %vm270_vm0, %v709_v50  ;;  %v696_v55 = vadd.f32 %v963_v51, %v306_v47  ;;  %v712_v56 = vadd.f32 %v987_v52, %v322_v48  ;;  %v315_v49 = vld [vmem:[%s1123_s6 + $0x60] sm:$0xff] }
  0xdc   : > { %v544_v57 = vpop.f32.mrf.mxu0  ;;  %v624_v58 = vpop.f32.mrf.mxu1  ;;  %v331_v50 = vld [vmem:[%s1123_s6 + $0xe0] sm:$0xff] }
  0xdd   : > { %728 = vst.msk [vmem:[%s1123_s6 + $0x18] sm:$0xff] %vm270_vm0, %v696_v55  ;;  %744 = vst.msk [vmem:[%s1123_s6 + $0x98] sm:$0xff] %vm270_vm0, %v712_v56  ;;  %v695_v61 = vadd.f32 %v544_v57, %v305_v53  ;;  %v711_v62 = vadd.f32 %v624_v58, %v321_v54  ;;  %v318_v55 = vld [vmem:[%s1123_s6 + $0x78] sm:$0xff] }
  0xde   : > { %v966_v63 = vpop.f32.mrf.mxu0  ;;  %v990_v0 = vpop.f32.mrf.mxu1  ;;  %v334_v56 = vld [vmem:[%s1123_s6 + $0xf8] sm:$0xff] }
  0xdf   : > { %727 = vst.msk [vmem:[%s1123_s6 + $0x10] sm:$0xff] %vm270_vm0, %v695_v61  ;;  %743 = vst.msk [vmem:[%s1123_s6 + $0x90] sm:$0xff] %vm270_vm0, %v711_v62  ;;  %v698_v3 = vadd.f32 %v966_v63, %v308_v59  ;;  %v714_v4 = vadd.f32 %v990_v0, %v324_v60  ;;  %v317_v61 = vld [vmem:[%s1123_s6 + $0x70] sm:$0xff] }
  0xe0   : > { %v554_v5 = vpop.f32.mrf.mxu0  ;;  %v634_v6 = vpop.f32.mrf.mxu1  ;;  %v333_v62 = vld [vmem:[%s1123_s6 + $0xf0] sm:$0xff] }
  0xe1   : > { %730 = vst.msk [vmem:[%s1123_s6 + $0x28] sm:$0xff] %vm270_vm0, %v698_v3  ;;  %746 = vst.msk [vmem:[%s1123_s6 + $0xa8] sm:$0xff] %vm270_vm0, %v714_v4  ;;  %v697_v9 = vadd.f32 %v554_v5, %v307_v1  ;;  %v713_v10 = vadd.f32 %v634_v6, %v323_v2 }
  0xe2   : > { %v969_v11 = vpop.f32.mrf.mxu0  ;;  %v993_v12 = vpop.f32.mrf.mxu1 }
  0xe3   : > { %729 = vst.msk [vmem:[%s1123_s6 + $0x20] sm:$0xff] %vm270_vm0, %v697_v9  ;;  %745 = vst.msk [vmem:[%s1123_s6 + $0xa0] sm:$0xff] %vm270_vm0, %v713_v10  ;;  %v700_v15 = vadd.f32 %v969_v11, %v310_v7  ;;  %v716_v16 = vadd.f32 %v993_v12, %v326_v8 }
  0xe4   : > { %v564_v17 = vpop.f32.mrf.mxu0  ;;  %v644_v18 = vpop.f32.mrf.mxu1 }
  0xe5   : > { %732 = vst.msk [vmem:[%s1123_s6 + $0x38] sm:$0xff] %vm270_vm0, %v700_v15  ;;  %748 = vst.msk [vmem:[%s1123_s6 + $0xb8] sm:$0xff] %vm270_vm0, %v716_v16  ;;  %v699_v21 = vadd.f32 %v564_v17, %v309_v13  ;;  %v715_v22 = vadd.f32 %v644_v18, %v325_v14 }
  0xe6   : > { %v972_v23 = vpop.f32.mrf.mxu0  ;;  %v996_v24 = vpop.f32.mrf.mxu1 }
  0xe7   : > { %731 = vst.msk [vmem:[%s1123_s6 + $0x30] sm:$0xff] %vm270_vm0, %v699_v21  ;;  %747 = vst.msk [vmem:[%s1123_s6 + $0xb0] sm:$0xff] %vm270_vm0, %v715_v22  ;;  %v702_v27 = vadd.f32 %v972_v23, %v312_v19  ;;  %v718_v28 = vadd.f32 %v996_v24, %v328_v20 }
  0xe8   : > { %v574_v29 = vpop.f32.mrf.mxu0  ;;  %v654_v30 = vpop.f32.mrf.mxu1 }
  0xe9   : > { %734 = vst.msk [vmem:[%s1123_s6 + $0x48] sm:$0xff] %vm270_vm0, %v702_v27  ;;  %750 = vst.msk [vmem:[%s1123_s6 + $0xc8] sm:$0xff] %vm270_vm0, %v718_v28  ;;  %v701_v33 = vadd.f32 %v574_v29, %v311_v25  ;;  %v717_v34 = vadd.f32 %v654_v30, %v327_v26 }
  0xea   : > { %v975_v35 = vpop.f32.mrf.mxu0  ;;  %v999_v36 = vpop.f32.mrf.mxu1 }
  0xeb   : > { %733 = vst.msk [vmem:[%s1123_s6 + $0x40] sm:$0xff] %vm270_vm0, %v701_v33  ;;  %749 = vst.msk [vmem:[%s1123_s6 + $0xc0] sm:$0xff] %vm270_vm0, %v717_v34  ;;  %v704_v39 = vadd.f32 %v975_v35, %v314_v31  ;;  %v720_v40 = vadd.f32 %v999_v36, %v330_v32 }
  0xec   : > { %v584_v41 = vpop.f32.mrf.mxu0  ;;  %v664_v42 = vpop.f32.mrf.mxu1 }
  0xed   : > { %736 = vst.msk [vmem:[%s1123_s6 + $0x58] sm:$0xff] %vm270_vm0, %v704_v39  ;;  %752 = vst.msk [vmem:[%s1123_s6 + $0xd8] sm:$0xff] %vm270_vm0, %v720_v40  ;;  %v703_v45 = vadd.f32 %v584_v41, %v313_v37  ;;  %v719_v46 = vadd.f32 %v664_v42, %v329_v38 }
  0xee   : > { %v978_v47 = vpop.f32.mrf.mxu0  ;;  %v1002_v48 = vpop.f32.mrf.mxu1 }
  0xef   : > { %735 = vst.msk [vmem:[%s1123_s6 + $0x50] sm:$0xff] %vm270_vm0, %v703_v45  ;;  %751 = vst.msk [vmem:[%s1123_s6 + $0xd0] sm:$0xff] %vm270_vm0, %v719_v46  ;;  %v706_v51 = vadd.f32 %v978_v47, %v316_v43  ;;  %v722_v52 = vadd.f32 %v1002_v48, %v332_v44 }
  0xf0   : > { %v594_v53 = vpop.f32.mrf.mxu0  ;;  %v674_v54 = vpop.f32.mrf.mxu1 }
  0xf1   : > { %738 = vst.msk [vmem:[%s1123_s6 + $0x68] sm:$0xff] %vm270_vm0, %v706_v51  ;;  %754 = vst.msk [vmem:[%s1123_s6 + $0xe8] sm:$0xff] %vm270_vm0, %v722_v52  ;;  %v705_v57 = vadd.f32 %v594_v53, %v315_v49  ;;  %v721_v58 = vadd.f32 %v674_v54, %v331_v50 }
  0xf2   : > { %v981_v59 = vpop.f32.mrf.mxu0  ;;  %v1005_v60 = vpop.f32.mrf.mxu1 }
  0xf3   : > { %737 = vst.msk [vmem:[%s1123_s6 + $0x60] sm:$0xff] %vm270_vm0, %v705_v57  ;;  %753 = vst.msk [vmem:[%s1123_s6 + $0xe0] sm:$0xff] %vm270_vm0, %v721_v58  ;;  %v708_v63 = vadd.f32 %v981_v59, %v318_v55  ;;  %v724_v0 = vadd.f32 %v1005_v60, %v334_v56 }
  0xf4   : > { %v604_v1 = vpop.f32.mrf.mxu0  ;;  %v684_v2 = vpop.f32.mrf.mxu1 }
  0xf5   : > { %740 = vst.msk [vmem:[%s1123_s6 + $0x78] sm:$0xff] %vm270_vm0, %v708_v63  ;;  %756 = vst.msk [vmem:[%s1123_s6 + $0xf8] sm:$0xff] %vm270_vm0, %v724_v0  ;;  %v707_v3 = vadd.f32 %v604_v1, %v317_v61  ;;  %v723_v4 = vadd.f32 %v684_v2, %v333_v62 }
  0xf7   : > { %739 = vst.msk [vmem:[%s1123_s6 + $0x70] sm:$0xff] %vm270_vm0, %v707_v3  ;;  %755 = vst.msk [vmem:[%s1123_s6 + $0xf0] sm:$0xff] %vm270_vm0, %v723_v4 }
  0xf8 PF: > { %s13_s14 = sadd.s32 1, %s1060_s14   ;;  %s1362_s12 = smov %s1056_s13 }
  0xf9   : > { %p10_p5 = scmp.ge.s32.totalorder %s13_s14, 4   ;;  %s1363_s13 = smov %s1365_s15 }
  0xfb   :  { %12 = sbr.rel (!%p10_p5) target bundleno = 2 (0x2), region = 72 }

</bundles_post_ra>
